<compile_context>
chip_gen: v7x
topology: tpu7x:2x2x1
jax: 0.10.0
libtpu: 0.0.40
codegen_flags: <defaults>
</compile_context>

<pallas_src>
import functools

import jax
import jax.numpy as jnp
from jax.experimental import pallas as pl
from jax.experimental.pallas import tpu as pltpu


def _round_up(v, m):
    return ((v + m - 1) // m) * m


@functools.lru_cache(maxsize=1)
def _default_vmem_limit_bytes():
    """Generation-aware scoped-VMEM limit: ~half of physical VMEM, conservative fallback."""
    try:
        info = pltpu.get_tpu_info()
        cap = int(getattr(info, "vmem_capacity_bytes", 64 * 1024 * 1024))
    except Exception:
        cap = 64 * 1024 * 1024  # conservative (v7x-sized) fallback
    return min(96 * 1024 * 1024, max(32 * 1024 * 1024, cap // 2))


def _vae_kernel(x_ref, eps_ref,
                w1_ref, b1_ref, w23_ref, b23_ref,
                w4_ref, b4_ref, w5_ref, b5_ref,
                xrec_ref, mulv_ref):
    z_dim = eps_ref.shape[-1]
    mxu_dtype = w1_ref.dtype  # bfloat16

    # --- encode: h = relu(x @ W1 + b1) (f32 accumulation, f32 elementwise) --
    x = x_ref[...].astype(mxu_dtype)
    h = jnp.dot(x, w1_ref[...], preferred_element_type=jnp.float32) + b1_ref[...]
    h = jnp.maximum(h, 0.0)

    # --- fused mu | log_var head: one MXU push, lane-dense padded output ----
    mulv = jnp.dot(h.astype(mxu_dtype), w23_ref[...],
                   preferred_element_type=jnp.float32) + b23_ref[...]
    mu = mulv[:, :z_dim]
    log_var = mulv[:, z_dim:2 * z_dim]

    # --- reparameterize: z = mu + eps * exp(log_var / 2) (f32) --------------
    z = mu + eps_ref[...] * jnp.exp(log_var * 0.5)

    # --- decode: h2 = relu(z @ W4 + b4); x_rec = sigmoid(h2 @ W5 + b5) ------
    h2 = jnp.dot(z.astype(mxu_dtype), w4_ref[...],
                 preferred_element_type=jnp.float32) + b4_ref[...]
    h2 = jnp.maximum(h2, 0.0)
    logits = jnp.dot(h2.astype(mxu_dtype), w5_ref[...],
                     preferred_element_type=jnp.float32) + b5_ref[...]

    # sigmoid(x) == 0.5 * (tanh(x/2) + 1): single EUP op instead of exp+divide.
    xrec = 0.5 * (jnp.tanh(logits * 0.5) + 1.0)

    xrec_ref[...] = xrec.astype(xrec_ref.dtype)
    mulv_ref[...] = mulv.astype(mulv_ref.dtype)


def prepare_params(params, *, mxu_dtype=jnp.bfloat16, head_lane_multiple=128):
    """One-time packing: bf16 weights, fused + lane-padded mu|log_var head.

    Call once (outside the per-step path); pass the result to vae_forward.
    """
    z_dim = params["w2"].shape[1]
    head = 2 * z_dim
    head_pad = _round_up(head, head_lane_multiple)

    w23 = jnp.concatenate([params["w2"], params["w3"]], axis=1)   # (h, 2z)
    b23 = jnp.concatenate([params["b2"], params["b3"]], axis=1)   # (1, 2z)
    if head_pad != head:
        w23 = jnp.pad(w23, ((0, 0), (0, head_pad - head)))
        b23 = jnp.pad(b23, ((0, 0), (0, head_pad - head)))

    packed = {
        "w1": params["w1"].astype(mxu_dtype),
        "b1": params["b1"].astype(jnp.float32),
        "w23": w23.astype(mxu_dtype),
        "b23": b23.astype(jnp.float32),
        "w4": params["w4"].astype(mxu_dtype),
        "b4": params["b4"].astype(jnp.float32),
        "w5": params["w5"].astype(mxu_dtype),
        "b5": params["b5"].astype(jnp.float32),
    }
    return jax.tree_util.tree_map(jnp.asarray, packed)


@functools.partial(jax.jit, static_argnames=("tile_b", "xrec_bf16"))
def vae_forward(x, eps, packed, *, tile_b=512, xrec_bf16=False):
    """Full VAE forward pass as one batch-tiled Pallas kernel.

    x:      (B, input_dim) float32
    eps:    (B, z_dim)     float32  (torch.randn_like equivalent, supplied explicitly)
    packed: output of prepare_params (bf16 weights, fused+padded mu|log_var head).
    Returns (x_reconst, mu, log_var).
    """
    B, input_dim = x.shape
    z_dim = eps.shape[1]
    h_dim = packed["w1"].shape[1]
    head_pad = packed["w23"].shape[1]
    assert head_pad >= 2 * z_dim

    # --- batch tiling ------------------------------------------------------
    tb = max(8, min(tile_b, _round_up(B, 8)))
    tb = _round_up(tb, 8)
    # v7x has 2 TensorCores; with "parallel" batch semantics make sure >=2 grid tiles
    # whenever the batch can be split (v5e/v6e unaffected).
    if B > 8 and pl.cdiv(B, tb) < 2:
        tb = _round_up(pl.cdiv(B, 2), 8)
    num_tiles = pl.cdiv(B, tb)
    b_pad = num_tiles * tb
    if b_pad != B:
        x = jnp.pad(x, ((0, b_pad - B), (0, 0)))
        eps = jnp.pad(eps, ((0, b_pad - B), (0, 0)))

    row_map = lambda i: (i, 0)
    const_map = lambda i: (0, 0)
    resident = lambda a: pl.BlockSpec(a.shape, const_map)   # VMEM-resident across tiles

    in_specs = [
        pl.BlockSpec((tb, input_dim), row_map),     # x
        pl.BlockSpec((tb, z_dim), row_map),         # eps
        resident(packed["w1"]), resident(packed["b1"]),
        resident(packed["w23"]), resident(packed["b23"]),
        resident(packed["w4"]), resident(packed["b4"]),
        resident(packed["w5"]), resident(packed["b5"]),
    ]
    xrec_dtype = jnp.bfloat16 if xrec_bf16 else jnp.float32
    out_specs = (
        pl.BlockSpec((tb, input_dim), row_map),     # x_reconst
        pl.BlockSpec((tb, head_pad), row_map),      # mu | log_var (lane-padded)
    )
    out_shapes = (
        jax.ShapeDtypeStruct((b_pad, input_dim), xrec_dtype),
        jax.ShapeDtypeStruct((b_pad, head_pad), jnp.float32),
    )

    # --- scheduler hint ----------------------------------------------------
    flops = 2 * b_pad * (input_dim * h_dim + h_dim * head_pad
                         + z_dim * h_dim + h_dim * input_dim)
    transcendentals = b_pad * (z_dim + input_dim)           # exp + tanh
    weight_bytes = (2 * (input_dim * h_dim + h_dim * head_pad
                         + z_dim * h_dim + h_dim * input_dim)
                    + 4 * (h_dim + head_pad + h_dim + input_dim))
    bytes_accessed = (b_pad * input_dim * 4                  # x in
                      + b_pad * z_dim * 4                    # eps in
                      + weight_bytes
                      + b_pad * input_dim * jnp.dtype(xrec_dtype).itemsize
                      + b_pad * head_pad * 4)                # mu|logvar out

    x_rec, mulv = pl.pallas_call(
        _vae_kernel,
        out_shape=out_shapes,
        grid=(num_tiles,),
        in_specs=in_specs,
        out_specs=out_specs,
        compiler_params=pltpu.CompilerParams(
            dimension_semantics=("parallel",),
            vmem_limit_bytes=_default_vmem_limit_bytes(),
        ),
        cost_estimate=pl.CostEstimate(
            flops=flops,
            transcendentals=transcendentals,
            bytes_accessed=bytes_accessed,
        ),
    )(x, eps,
      packed["w1"], packed["b1"], packed["w23"], packed["b23"],
      packed["w4"], packed["b4"], packed["w5"], packed["b5"])

    x_rec = x_rec[:B]
    mu = mulv[:B, :z_dim]
    log_var = mulv[:B, z_dim:2 * z_dim]
    return x_rec, mu, log_var


# ----------------------------- reference / setup -----------------------------

def xavier_normal(key, fan_in, fan_out):
    # matches torch.nn.init.xavier_normal_ (gain=1.0), stored as (in, out) = W.T
    std = jnp.sqrt(2.0 / (fan_in + fan_out))
    return std * jax.random.normal(key, (fan_in, fan_out), dtype=jnp.float32)


def make_params(key, input_dim, h_dim, z_dim):
    ks = jax.random.split(key, 5)
    # Only weights are re-initialized in the PyTorch module; biases kept at zero here.
    return {
        "w1": xavier_normal(ks[0], input_dim, h_dim),
        "b1": jnp.zeros((1, h_dim), jnp.float32),
        "w2": xavier_normal(ks[1], h_dim, z_dim),
        "b2": jnp.zeros((1, z_dim), jnp.float32),
        "w3": xavier_normal(ks[2], h_dim, z_dim),
        "b3": jnp.zeros((1, z_dim), jnp.float32),
        "w4": xavier_normal(ks[3], z_dim, h_dim),
        "b4": jnp.zeros((1, h_dim), jnp.float32),
        "w5": xavier_normal(ks[4], h_dim, input_dim),
        "b5": jnp.zeros((1, input_dim), jnp.float32),
    }


def vae_forward_ref(x, eps, params):
    """Pure-JAX f32 reference for correctness checking."""
    h = jax.nn.relu(x @ params["w1"] + params["b1"])
    mu = h @ params["w2"] + params["b2"]
    log_var = h @ params["w3"] + params["b3"]
    z = mu + eps * jnp.exp(log_var / 2.0)
    h2 = jax.nn.relu(z @ params["w4"] + params["b4"])
    x_rec = jax.nn.sigmoid(h2 @ params["w5"] + params["b5"])
    return x_rec, mu, log_var


if __name__ == "__main__":
    # Small shapes consistent with the module's Linear stack.
    B, INPUT_DIM, H_DIM, Z_DIM = 16, 128, 64, 32

    root = jax.random.PRNGKey(0)
    k_params, k_x, k_eps = jax.random.split(root, 3)

    params = make_params(k_params, INPUT_DIM, H_DIM, Z_DIM)
    packed = prepare_params(params)   # one-time: bf16 cast + fused/padded head

    x = jax.random.normal(k_x, (B, INPUT_DIM), dtype=jnp.float32)
    # torch.randn_like(std) -> explicit deterministic eps so the kernel is reproducible.
    eps = jax.random.normal(k_eps, (B, Z_DIM), dtype=jnp.float32)

    # Default tile_b: heuristic splits B=16 into 2 tiles of 8 (exercises the batch grid).
    x_rec, mu, log_var = vae_forward(x, eps, packed)
    jax.block_until_ready((x_rec, mu, log_var))

    # Sanity check vs. the pure-f32 reference (loose tolerance: bf16 MXU inputs).
    x_rec_ref, mu_ref, log_var_ref = vae_forward_ref(x, eps, params)
    assert x_rec.shape == (B, INPUT_DIM) and mu.shape == (B, Z_DIM) and log_var.shape == (B, Z_DIM)
    assert jnp.allclose(x_rec, x_rec_ref, atol=3e-2, rtol=3e-2)
    assert jnp.allclose(mu, mu_ref, atol=3e-2, rtol=3e-2)
    assert jnp.allclose(log_var, log_var_ref, atol=3e-2, rtol=3e-2)

    print("KERNEL_OK")
</pallas_src>

<mosaic_0001>
module attributes {stable_mosaic.version = 11 : i64} {
  func.func @_vae_kernel(%arg0: i32, %arg1: memref<8x128xf32, #tpu.memory_space<vmem>>, %arg2: memref<8x32xf32, #tpu.memory_space<vmem>>, %arg3: memref<128x64xbf16, #tpu.memory_space<vmem>>, %arg4: memref<1x64xf32, #tpu.memory_space<vmem>>, %arg5: memref<64x128xbf16, #tpu.memory_space<vmem>>, %arg6: memref<1x128xf32, #tpu.memory_space<vmem>>, %arg7: memref<32x64xbf16, #tpu.memory_space<vmem>>, %arg8: memref<1x64xf32, #tpu.memory_space<vmem>>, %arg9: memref<64x128xbf16, #tpu.memory_space<vmem>>, %arg10: memref<1x128xf32, #tpu.memory_space<vmem>>, %arg11: memref<8x128xf32, #tpu.memory_space<vmem>>, %arg12: memref<8x128xf32, #tpu.memory_space<vmem>>) attributes {dimension_semantics = [#tpu.dimension_semantics<parallel>], iteration_bounds = array<i64: 2>, scalar_prefetch = 0 : i64, scratch_operands = 0 : i64, tpu.core_type = #tpu.core_type<tc>, window_params = [{transform_indices = @transform_0, window_bounds = array<i64: 8, 128>}, {transform_indices = @transform_1, window_bounds = array<i64: 8, 32>}, {pipeline_mode = #tpu.pipeline_mode<synchronous>, transform_indices = @transform_2, window_bounds = array<i64: 128, 64>}, {pipeline_mode = #tpu.pipeline_mode<synchronous>, transform_indices = @transform_3, window_bounds = array<i64: 1, 64>}, {pipeline_mode = #tpu.pipeline_mode<synchronous>, transform_indices = @transform_4, window_bounds = array<i64: 64, 128>}, {pipeline_mode = #tpu.pipeline_mode<synchronous>, transform_indices = @transform_5, window_bounds = array<i64: 1, 128>}, {pipeline_mode = #tpu.pipeline_mode<synchronous>, transform_indices = @transform_6, window_bounds = array<i64: 32, 64>}, {pipeline_mode = #tpu.pipeline_mode<synchronous>, transform_indices = @transform_7, window_bounds = array<i64: 1, 64>}, {pipeline_mode = #tpu.pipeline_mode<synchronous>, transform_indices = @transform_8, window_bounds = array<i64: 64, 128>}, {pipeline_mode = #tpu.pipeline_mode<synchronous>, transform_indices = @transform_9, window_bounds = array<i64: 1, 128>}, {transform_indices = @transform_10, window_bounds = array<i64: 8, 128>}, {transform_indices = @transform_11, window_bounds = array<i64: 8, 128>}]} {
    %c0 = arith.constant 0 : index
    %c0_0 = arith.constant 0 : index
    %0 = vector.load %arg1[%c0, %c0_0] : memref<8x128xf32, #tpu.memory_space<vmem>>, vector<8x128xf32>
    %1 = arith.truncf %0 : vector<8x128xf32> to vector<8x128xbf16>
    %c0_1 = arith.constant 0 : index
    %c0_2 = arith.constant 0 : index
    %2 = vector.load %arg3[%c0_1, %c0_2] : memref<128x64xbf16, #tpu.memory_space<vmem>>, vector<128x64xbf16>
    %cst = arith.constant dense<0.000000e+00> : vector<8x64xf32>
    %3 = tpu.matmul %1, %2, %cst {dimension_numbers = #tpu.dot_dimension_numbers<[1], [0], [0], [1], [0, 0, 1, 1], [], []>} : vector<8x128xbf16>, vector<128x64xbf16>, vector<8x64xf32> -> vector<8x64xf32>
    %c0_3 = arith.constant 0 : index
    %c0_4 = arith.constant 0 : index
    %4 = vector.load %arg4[%c0_3, %c0_4] : memref<1x64xf32, #tpu.memory_space<vmem>>, vector<1x64xf32>
    %5 = vector.broadcast %4 : vector<1x64xf32> to vector<8x64xf32>
    %6 = arith.addf %3, %5 : vector<8x64xf32>
    %cst_5 = arith.constant 0.000000e+00 : f32
    %7 = vector.broadcast %cst_5 : f32 to vector<8x64xf32>
    %8 = arith.maximumf %6, %7 : vector<8x64xf32>
    %9 = arith.truncf %8 : vector<8x64xf32> to vector<8x64xbf16>
    %c0_6 = arith.constant 0 : index
    %c0_7 = arith.constant 0 : index
    %10 = vector.load %arg5[%c0_6, %c0_7] : memref<64x128xbf16, #tpu.memory_space<vmem>>, vector<64x128xbf16>
    %cst_8 = arith.constant dense<0.000000e+00> : vector<8x128xf32>
    %11 = tpu.matmul %9, %10, %cst_8 {dimension_numbers = #tpu.dot_dimension_numbers<[1], [0], [0], [1], [0, 0, 1, 1], [], []>} : vector<8x64xbf16>, vector<64x128xbf16>, vector<8x128xf32> -> vector<8x128xf32>
    %c0_9 = arith.constant 0 : index
    %c0_10 = arith.constant 0 : index
    %12 = vector.load %arg6[%c0_9, %c0_10] : memref<1x128xf32, #tpu.memory_space<vmem>>, vector<1x128xf32>
    %13 = vector.broadcast %12 : vector<1x128xf32> to vector<8x128xf32>
    %14 = arith.addf %11, %13 : vector<8x128xf32>
    %15 = vector.extract_strided_slice %14 {offsets = [0, 0], sizes = [8, 32], strides = [1, 1]} : vector<8x128xf32> to vector<8x32xf32>
    %16 = vector.extract_strided_slice %14 {offsets = [0, 32], sizes = [8, 32], strides = [1, 1]} : vector<8x128xf32> to vector<8x32xf32>
    %c0_11 = arith.constant 0 : index
    %c0_12 = arith.constant 0 : index
    %17 = vector.load %arg2[%c0_11, %c0_12] : memref<8x32xf32, #tpu.memory_space<vmem>>, vector<8x32xf32>
    %cst_13 = arith.constant 5.000000e-01 : f32
    %18 = vector.broadcast %cst_13 : f32 to vector<8x32xf32>
    %19 = arith.mulf %16, %18 : vector<8x32xf32>
    %20 = math.exp %19 : vector<8x32xf32>
    %21 = arith.mulf %17, %20 : vector<8x32xf32>
    %22 = arith.addf %15, %21 : vector<8x32xf32>
    %23 = arith.truncf %22 : vector<8x32xf32> to vector<8x32xbf16>
    %c0_14 = arith.constant 0 : index
    %c0_15 = arith.constant 0 : index
    %24 = vector.load %arg7[%c0_14, %c0_15] : memref<32x64xbf16, #tpu.memory_space<vmem>>, vector<32x64xbf16>
    %cst_16 = arith.constant dense<0.000000e+00> : vector<8x64xf32>
    %25 = tpu.matmul %23, %24, %cst_16 {dimension_numbers = #tpu.dot_dimension_numbers<[1], [0], [0], [1], [0, 0, 1, 1], [], []>} : vector<8x32xbf16>, vector<32x64xbf16>, vector<8x64xf32> -> vector<8x64xf32>
    %c0_17 = arith.constant 0 : index
    %c0_18 = arith.constant 0 : index
    %26 = vector.load %arg8[%c0_17, %c0_18] : memref<1x64xf32, #tpu.memory_space<vmem>>, vector<1x64xf32>
    %27 = vector.broadcast %26 : vector<1x64xf32> to vector<8x64xf32>
    %28 = arith.addf %25, %27 : vector<8x64xf32>
    %cst_19 = arith.constant 0.000000e+00 : f32
    %29 = vector.broadcast %cst_19 : f32 to vector<8x64xf32>
    %30 = arith.maximumf %28, %29 : vector<8x64xf32>
    %31 = arith.truncf %30 : vector<8x64xf32> to vector<8x64xbf16>
    %c0_20 = arith.constant 0 : index
    %c0_21 = arith.constant 0 : index
    %32 = vector.load %arg9[%c0_20, %c0_21] : memref<64x128xbf16, #tpu.memory_space<vmem>>, vector<64x128xbf16>
    %cst_22 = arith.constant dense<0.000000e+00> : vector<8x128xf32>
    %33 = tpu.matmul %31, %32, %cst_22 {dimension_numbers = #tpu.dot_dimension_numbers<[1], [0], [0], [1], [0, 0, 1, 1], [], []>} : vector<8x64xbf16>, vector<64x128xbf16>, vector<8x128xf32> -> vector<8x128xf32>
    %c0_23 = arith.constant 0 : index
    %c0_24 = arith.constant 0 : index
    %34 = vector.load %arg10[%c0_23, %c0_24] : memref<1x128xf32, #tpu.memory_space<vmem>>, vector<1x128xf32>
    %35 = vector.broadcast %34 : vector<1x128xf32> to vector<8x128xf32>
    %36 = arith.addf %33, %35 : vector<8x128xf32>
    %cst_25 = arith.constant 5.000000e-01 : f32
    %37 = vector.broadcast %cst_25 : f32 to vector<8x128xf32>
    %38 = arith.mulf %36, %37 : vector<8x128xf32>
    %39 = math.tanh %38 : vector<8x128xf32>
    %cst_26 = arith.constant 1.000000e+00 : f32
    %40 = vector.broadcast %cst_26 : f32 to vector<8x128xf32>
    %41 = arith.addf %39, %40 : vector<8x128xf32>
    %cst_27 = arith.constant 5.000000e-01 : f32
    %42 = vector.broadcast %cst_27 : f32 to vector<8x128xf32>
    %43 = arith.mulf %42, %41 : vector<8x128xf32>
    %c0_28 = arith.constant 0 : index
    %c0_29 = arith.constant 0 : index
    %44 = vector.load %arg11[%c0_28, %c0_29] : memref<8x128xf32, #tpu.memory_space<vmem>>, vector<8x128xf32>
    tpu.vector_store %arg11[%c0_28, %c0_29], %43 {strides = array<i32>} : memref<8x128xf32, #tpu.memory_space<vmem>>, vector<8x128xf32>,
    %c0_30 = arith.constant 0 : index
    %c0_31 = arith.constant 0 : index
    %45 = vector.load %arg12[%c0_30, %c0_31] : memref<8x128xf32, #tpu.memory_space<vmem>>, vector<8x128xf32>
    tpu.vector_store %arg12[%c0_30, %c0_31], %14 {strides = array<i32>} : memref<8x128xf32, #tpu.memory_space<vmem>>, vector<8x128xf32>,
    return
  }
  func.func @transform_0(%arg0: i32) -> (i32, i32) {
    %c0_i32 = arith.constant 0 : i32
    %c0_i32_0 = arith.constant 0 : i32
    return %arg0, %c0_i32 : i32, i32
  }
  func.func @transform_1(%arg0: i32) -> (i32, i32) {
    %c0_i32 = arith.constant 0 : i32
    %c0_i32_0 = arith.constant 0 : i32
    return %arg0, %c0_i32 : i32, i32
  }
  func.func @transform_2(%arg0: i32) -> (i32, i32) {
    %c0_i32 = arith.constant 0 : i32
    %c0_i32_0 = arith.constant 0 : i32
    %c0_i32_1 = arith.constant 0 : i32
    return %c0_i32, %c0_i32_0 : i32, i32
  }
  func.func @transform_3(%arg0: i32) -> (i32, i32) {
    %c0_i32 = arith.constant 0 : i32
    %c0_i32_0 = arith.constant 0 : i32
    %c0_i32_1 = arith.constant 0 : i32
    return %c0_i32, %c0_i32_0 : i32, i32
  }
  func.func @transform_4(%arg0: i32) -> (i32, i32) {
    %c0_i32 = arith.constant 0 : i32
    %c0_i32_0 = arith.constant 0 : i32
    %c0_i32_1 = arith.constant 0 : i32
    return %c0_i32, %c0_i32_0 : i32, i32
  }
  func.func @transform_5(%arg0: i32) -> (i32, i32) {
    %c0_i32 = arith.constant 0 : i32
    %c0_i32_0 = arith.constant 0 : i32
    %c0_i32_1 = arith.constant 0 : i32
    return %c0_i32, %c0_i32_0 : i32, i32
  }
  func.func @transform_6(%arg0: i32) -> (i32, i32) {
    %c0_i32 = arith.constant 0 : i32
    %c0_i32_0 = arith.constant 0 : i32
    %c0_i32_1 = arith.constant 0 : i32
    return %c0_i32, %c0_i32_0 : i32, i32
  }
  func.func @transform_7(%arg0: i32) -> (i32, i32) {
    %c0_i32 = arith.constant 0 : i32
    %c0_i32_0 = arith.constant 0 : i32
    %c0_i32_1 = arith.constant 0 : i32
    return %c0_i32, %c0_i32_0 : i32, i32
  }
  func.func @transform_8(%arg0: i32) -> (i32, i32) {
    %c0_i32 = arith.constant 0 : i32
    %c0_i32_0 = arith.constant 0 : i32
    %c0_i32_1 = arith.constant 0 : i32
    return %c0_i32, %c0_i32_0 : i32, i32
  }
  func.func @transform_9(%arg0: i32) -> (i32, i32) {
    %c0_i32 = arith.constant 0 : i32
    %c0_i32_0 = arith.constant 0 : i32
    %c0_i32_1 = arith.constant 0 : i32
    return %c0_i32, %c0_i32_0 : i32, i32
  }
  func.func @transform_10(%arg0: i32) -> (i32, i32) {
    %c0_i32 = arith.constant 0 : i32
    %c0_i32_0 = arith.constant 0 : i32
    return %arg0, %c0_i32 : i32, i32
  }
  func.func @transform_11(%arg0: i32) -> (i32, i32) {
    %c0_i32 = arith.constant 0 : i32
    %c0_i32_0 = arith.constant 0 : i32
    return %arg0, %c0_i32 : i32, i32
  }
}

</mosaic_0001>

<bundles_post_ra>
// kernel: vae_forward.1
= control target key start
LH: loop header
LB: loop body
LE: loop exit
PB: predicated region body
PF: predicated region fallthrough
CT: control target
= control target key end

     0   :  { %17 = vsyncpa [#allocation3], 0  ;;  %s1607_s0 = inlined_call_operand.vmem [shape: f32[16,128], index: 0, kind: input, shape index: {}]   ;;  %s1608_s1 = inlined_call_operand.vmem [shape: f32[16,32], index: 1, kind: input, shape index: {}]   ;;  %s1609_s2 = inlined_call_operand.vmem [shape: bf16[128,64], index: 2, kind: input, shape index: {}]   ;;  %s1610_s3 = inlined_call_operand.vmem [shape: f32[1,64], index: 3, kind: input, shape index: {}]   ;;  %s1611_s4 = inlined_call_operand.vmem [shape: bf16[64,128], index: 4, kind: input, shape index: {}]   ;;  %s1612_s5 = inlined_call_operand.vmem [shape: f32[1,128], index: 5, kind: input, shape index: {}]   ;;  %s1613_s6 = inlined_call_operand.vmem [shape: bf16[32,64], index: 6, kind: input, shape index: {}]   ;;  %s1614_s7 = inlined_call_operand.hbm [shape: f32[1,64], index: 7, kind: input, shape index: {}]   ;;  %s1615_s8 = inlined_call_operand.vmem [shape: bf16[64,128], index: 8, kind: input, shape index: {}]   ;;  %s1616_s9 = inlined_call_operand.hbm [shape: f32[1,128], index: 9, kind: input, shape index: {}]   ;;  %s1617_s10 = inlined_call_operand.hbm [shape: f32[16,128], index: 10, kind: output, shape index: {0}]   ;;  %s1618_s11 = inlined_call_operand.vmem [shape: f32[16,128], index: 11, kind: output, shape index: {1}]  }
   0x1   :  { %18 = vsyncpa [#allocation6], 0 }
   0x2   :  { %19 = vsyncpa [#allocation4], 0 }
   0x3   :  { %21 = vsyncpa [#allocation4 + $0x1], 0  ;;  %s1335_s17 = smov 0   ;;  %s1337_s18 = smov 0  }
   0x4   :  { %s1339_s19 = smov 0   ;;  %s1341_s20 = smov 0  }
   0x5 LB: > { %1625 = sst [smem:[#allocation11_spill]] %s1263_s19  ;;  %s1356_s21 = sadd.s32 4294967295, %s1267_s20   ;;  %s1267_s20 = sphi %s1341_s20, %s1639_s20   ;;  %s1263_s19 = sphi %s1339_s19, %s1641_s19   ;;  %s1259_s18 = sphi %s1337_s18, %s1643_s18   ;;  %s1255_s17 = sphi %s1335_s17, %s1642_s17  }
   0x6   : > { %s941_s22 = sadd.s32 4294967294, %s1267_s20   ;;  %s1360_s23 = sadd.s32 1, %s1267_s20  }
   0x7   : > { %1626 = sst [smem:[#allocation12_spill]] %s1360_s23  ;;  %s254_s24 = sadd.s32 1, %s1263_s19 }
   0x8   : > { %s251_s25 = ssub.s32 %s1267_s20, %s1360_s23  ;;  %p264_p0 = scmp.ne.s32.totalorder %s1263_s19, %s1259_s18 }
   0x9   : > { %p252_p1 = scmp.eq.s32.totalorder %s251_s25, 0  ;;  %p265_p2 = scmp.eq.s32.totalorder %s1356_s21, 1 }
   0xa   : > { %p270_p3 = scmp.ne.s32.totalorder %s1259_s18, %s1255_s17  ;;  %p271_p4 = scmp.eq.s32.totalorder %s941_s22, 1 }
   0xb   : > { %s1371_s26 = scalar_select %p252_p1, %s1263_s19, %s254_s24  }
   0xc   : > { %p1373_p5 = por %p265_p2, %p264_p0  ;;  %p1377_p6 = por %p271_p4, %p270_p3 }
   0xd   : > { %1627 = sst [smem:[#allocation13_spill]] %s1371_s26  ;;  %p942_p7 = scmp.ge.s32.totalorder %s1267_s20, 1 }
   0xe   : > { %s1628_s27 = scalar_select %p1373_p5, 1, 0 }
   0xf   : > { %s1629_s28 = scalar_select %p1377_p6, 1, 0 }
  0x10   : > { %p304_p8 = scmp.lt.s32.totalorder %s1267_s20, 3  ;;  %p1620_p9 = scmp.eq.s32.totalorder %s1356_s21, 0 }
  0x11   : > { %s1269_s30 = smov [#allocation2]   ;;  %s1270_s13 = smov [#allocation5]  }
  0x12   : > { %p1384_p10 = pnand %p942_p7, %p304_p8  ;;  %s332_s12 = sshll.u32 %s1269_s30, 4  ;;  %s333_s12 = int_to_ptr.vmem [resolvable:$true] %s332_s12 }
  0x13   : > { %s346_s14 = sshll.u32 %s1270_s13, 4  ;;  %s1141_s24 = scalar_lea.hbm %s1614_s7, 16  ;;  %s1396_s14 = int_to_ptr.vmem [resolvable:$true] %s346_s14 }
  0x14   : > { %s1630_s29 = scalar_select %p1384_p10, 1, 0 }
  0x15   : > { %p1066_p11 = pneg %p1384_p10  ;;  %p1142_p13 = scmp.ne.s32.totalorder %s1614_s7, %s1141_s24 }
  0x16   : > { %p1148_p3 = scmp.lt.u32.totalorder %s1141_s24, %s1614_s7 }
  0x17   : > { %p1392_p12 = pnand %p1620_p9, %p1066_p11 }
  0x19   : > { %p1143_p0 = pneg %p1392_p12 }
  0x1b   : > { %p1144_p1 = pnand %p1143_p0, %p1142_p13 }
  0x1d   : > { %p1145_p2 = pneg %p1144_p1 }
  0x1f   : > { %p1150_p4 = pnand %p1148_p3, %p1145_p2 }
  0x21   : > { %1153 = shalt.err (!%p1150_p4)
}
  0x22   : > { %s1154_s19 = scalar_lea.vmem %s333_s12, 16  ;;  %s1161_s16 = scalar_lea.vmem %s333_s12, 32 }
  0x23   : > { %p1155_p7 = scmp.ne.s32.totalorder %s333_s12, %s1154_s19  ;;  %p1162_p9 = scmp.lt.s32.totalorder %s333_s12, %s333_s12 }
  0x24   : > { %p1163_p6 = scmp.lt.s32.totalorder %s1161_s16, %s1154_s19 }
  0x25   : > { %p1157_p8 = pnand %p1155_p7, %p1143_p0 }
  0x26   : > { %p1164_p5 = por %p1163_p6, %p1162_p9 }
  0x27   : > { %p1158_p11 = pneg %p1157_p8 }
  0x29   : > { %p1165_p10 = pnand %p1164_p5, %p1158_p11 }
  0x2b   : > { %1168 = shalt.err (!%p1165_p10)
}
  0x2c   : > { %1069 = dma.hbm_to_vmem [thread:$0]  (!%p1392_p12), %s1614_s7, 16, %s333_s12, [#allocation3]  }
  0x2d   : > { %s1169_s30 = scalar_lea.hbm %s1616_s9, 16 }
  0x2e   : > { %p1170_p13 = scmp.ne.s32.totalorder %s1616_s9, %s1169_s30  ;;  %p1176_p9 = scmp.lt.u32.totalorder %s1169_s30, %s1616_s9 }
  0x30   : > { %p1172_p6 = pnand %p1170_p13, %p1143_p0 }
  0x32   : > { %p1173_p5 = pneg %p1172_p6 }
  0x34   : > { %p1178_p10 = pnand %p1176_p9, %p1173_p5 }
  0x36   : > { %1181 = shalt.err (!%p1178_p10)
}
  0x37   : > { %s1182_s12 = scalar_lea.vmem %s1396_s14, 16  ;;  %s1189_s23 = scalar_lea.vmem %s1396_s14, 32 }
  0x38   : > { %p1183_p1 = scmp.ne.s32.totalorder %s1396_s14, %s1182_s12  ;;  %p1190_p4 = scmp.lt.s32.totalorder %s1396_s14, %s1396_s14 }
  0x39   : > { %p1191_p7 = scmp.lt.s32.totalorder %s1189_s23, %s1182_s12 }
  0x3a   : > { %p1185_p2 = pnand %p1183_p1, %p1143_p0 }
  0x3b   : > { %p1192_p8 = por %p1191_p7, %p1190_p4 }
  0x3c   : > { %p1186_p3 = pneg %p1185_p2 }
  0x3e   : > { %p1193_p11 = pnand %p1192_p8, %p1186_p3 }
  0x40   : > { %1196 = shalt.err (!%p1193_p11)
}
  0x41   : > { %1072 = dma.hbm_to_vmem [thread:$0]  (!%p1392_p12), %s1616_s9, 16, %s1396_s14, [#allocation6]  }
  0x42   : > { %p1632_p13 = scmp.ne.s32.totalorder %s1630_s29, 0 }
  0x43   : > { %p1633_p0 = scmp.eq.s32.totalorder (!%p1632_p13), %s1356_s21, 0 }
  0x44   : > { %373 = sbr.rel (%p1632_p13) target bundleno = 1144 (0x478), region = 60 }
  0x4b   : > { %1242 = dma.done.wait (%p1633_p0), [#allocation3], 16   ;;  %p1634_p6 = pmov %p1633_p0 }
  0x4c   : > { %p1635_p5 = pmov %p1633_p0 }
  0x4d   : > { %1244 = vsyncadd (%p1634_p6), [#allocation3], 4294967280 }
  0x4e   : > { %1246 = dma.done.wait (%p1635_p5), [#allocation6], 16   ;;  %p1636_p9 = pmov %p1633_p0 }
  0x4f   : > { %v1271_v0 = vmov 0.0   ;;  %vm1272_vm0 = vmmov 0   ;;  %v1119_v1 = vld [vmem:[%s1609_s2] sm:$0xff]   ;;  %v1120_v2 = vld [vmem:[%s1609_s2 + $0x8] sm:$0xff]   ;;  %v1121_v3 = vld [vmem:[%s1609_s2 + $0x10] sm:$0xff]   ;;  %p424_p12 = scmp.lt.s32.totalorder %s1356_s21, 1 }
  0x50   : > { %1248 = vsyncadd (%p1636_p9), [#allocation6], 4294967280  ;;  %1004 = vmatprep.subr.bf16.mxu0 %v1271_v0  ;;  %1020 = vmatprep.mubr.msk.bf16.mxu0 %vm1272_vm0, %v1271_v0  ;;  %v1127_v4 = vld [vmem:[%s1611_s4] sm:$0xff]   ;;  %v1122_v5 = vld [vmem:[%s1609_s2 + $0x18] sm:$0xff]   ;;  %vm591_vm1 = vcmask 523264   ;;  %s1273_s15 = smov 96  }
  0x51   : > { %1024 = vmatprep.subr.bf16.mxu1 %v1271_v0  ;;  %1032 = vmatprep.mubr.msk.bf16.mxu1 %vm1272_vm0, %v1271_v0  ;;  %v1128_v6 = vld [vmem:[%s1611_s4 + $0x8] sm:$0xff]   ;;  %v1123_v7 = vld [vmem:[%s1609_s2 + $0x20] sm:$0xff]   ;;  %s425_s14 = scalar_select %p424_p12, %s1356_s21, 1  ;;  %v1125_v9 = vld [vmem:[%s1609_s2 + $0x30] sm:$0xff]   ;;  %vm669_vm2 = vcmask 261120  }
  0x52   : > { %1005 = vmatpush3.bf16.msra.mxu0 %v1119_v1  ;;  %1025 = vmatpush3.bf16.msra.mxu1 %v1127_v4  ;;  %v1124_v8 = vld [vmem:[%s1609_s2 + $0x28] sm:$0xff]   ;;  %v1126_v10 = vld [vmem:[%s1609_s2 + $0x38] sm:$0xff]   ;;  %v1129_v13 = vld [vmem:[%s1611_s4 + $0x10] sm:$0xff]   ;;  %s979_s24 = sshll.u32 %s1356_s21, 7  ;;  %p1637_p1 = scmp.ne.s32.totalorder %s1628_s27, 0 }
  0x53   : > { %1006 = vmatprep.subr.bf16.mxu0 %v1271_v0  ;;  %1026 = vmatprep.subr.bf16.mxu1 %v1271_v0  ;;  %s1495_s25 = sshll.u32 %s425_s14, 3  ;;  %v1130_v14 = vld [vmem:[%s1611_s4 + $0x18] sm:$0xff]   ;;  %v953_v15 = vld [vmem:[%s1610_s3] ss:$0 sm:$0xff]  ;;  %v1132_v32 = vld [vmem:[%s1613_s6 + $0x8] sm:$0xff]   ;;  %s415_s14 = sand.u32 1, %s1259_s18  }
  0x54   : > { %s427_s12 = scalar_lea.vmem %s1607_s0, %s1495_s25  ;;  %v1131_v23 = vld [vmem:[%s1613_s6] sm:$0xff]   ;;  %s435_s26 = scalar_lea.vmem %s1618_s11, %s1495_s25  ;;  %v1134_v40 = vld [vmem:[%s1615_s8 + $0x8] sm:$0xff]   ;;  %v1135_v41 = vld [vmem:[%s1615_s8 + $0x10] sm:$0xff]  }
  0x55   : > { %v437_v11 = vld [vmem:[%s427_s12] sm:$0xff]  ;;  %s431_s13 = scalar_lea.vmem %s1608_s1, %s1495_s25  ;;  %v1136_v42 = vld [vmem:[%s1615_s8 + $0x18] sm:$0xff]   ;;  %s1565_s12 = scalar_lea.hbm %s1617_s10, %s979_s24 }
  0x56   : > { %1007 = vmatpush3.bf16.msra.mxu0 %v1120_v2  ;;  %1027 = vmatpush3.bf16.msra.mxu1 %v1128_v6  ;;  %v438_v12 = vpack.c.bf16 %v437_v11, %v437_v11  ;;  %v962_v24 = vld [vmem:[%s1612_s5] ss:$0 sm:$0xff]  ;;  %v972_v51 = vld [vmem:[#allocation5] ss:$0 sm:$0xff]  ;;  %s804_s23 = scalar_lea.sflag [#allocation4], %s415_s14  ;;  %s1274_s21 = smov [#allocation7]  }
  0x57   : > { %1008 = vmatprep.subr.bf16.mxu0 %v1271_v0  ;;  %1028 = vmatprep.subr.bf16.mxu1 %v1271_v0  ;;  %v635_v34 = vld [vmem:[%s431_s13] sm:$0xff]  ;;  %s1201_s22 = sshll.u32 %s1274_s21, 4  ;;  %s1202_s22 = int_to_ptr.vmem [resolvable:$false] %s1201_s22 }
  0x58   : > { %v1133_v38 = vld [vmem:[%s1615_s8] sm:$0xff]  }
  0x59   : > { %v968_v43 = vld [vmem:[#allocation2] ss:$0 sm:$0xff] }
  0x5a   : > { %1009 = vmatpush3.bf16.msra.mxu0 %v1121_v3  ;;  %1029 = vmatpush3.bf16.msra.mxu1 %v1129_v13 }
  0x5b   : > { %1010 = vmatprep.subr.bf16.mxu0 %v1271_v0  ;;  %1030 = vmatprep.subr.bf16.mxu1 %v1271_v0 }
  0x5e   : > { %1011 = vmatpush3.bf16.msra.mxu0 %v1122_v5  ;;  %1031 = vmatpush3.bf16.msra.mxu1 %v1130_v14 }
  0x5f   : > { %1012 = vmatprep.subr.bf16.mxu0 %v1271_v0  ;;  %1036 = vmatprep.subr.bf16.mxu1 %v1271_v0 }
  0x62   : > { %1013 = vmatpush3.bf16.msra.mxu0 %v1123_v7 }
  0x63   : > { %1014 = vmatprep.subr.bf16.mxu0 %v1271_v0 }
  0x66   : > { %1015 = vmatpush3.bf16.msra.mxu0 %v1124_v8 }
  0x67   : > { %1016 = vmatprep.subr.bf16.mxu0 %v1271_v0 }
  0x6a   : > { %1017 = vmatpush3.bf16.msra.mxu0 %v1125_v9 }
  0x6b   : > { %1018 = vmatprep.subr.bf16.mxu0 %v1271_v0 }
  0x6e   : > { %1019 = vmatpush3.bf16.msra.mxu0 %v1126_v10 }
  0x71   : > { %1021 = vmatmul.mubr.bf16.vlgmr.msra.gmra.mrb[0].mxu0 %v438_v12 }
 0x144   : > { %v544_v16 = vpop.f32.mrb[0].mxu0 }
 0x145   : > { %v545_v17 = vadd.f32 %v953_v15, %v544_v16  ;;  %v1022_v18 = vpop.f32.mrb[1].mxu0 }
 0x146   : > { %v547_v19 = vpop.f32.mrb[2].mxu0 }
 0x147   : > { %v550_v20 = vmax.f32 %v545_v17, 0.0  ;;  %v1023_v21 = vpop.f32.mrb[3].mxu0 }
 0x149   : > { %v551_v22 = vpack.c.bf16 %v550_v20, %v550_v20 }
 0x14b   : > { %1033 = vmatmul.mubr.msk.bf16.vlgmr.msra.gmra.mrb[0].mxu1 %vm591_vm1, %v551_v22 }
 0x14c   : > { %1040 = vmatprep.mubr.msk.bf16.mxu1 %vm1272_vm0, %v1271_v0  ;;  %1037 = vmatpush3.bf16.msra.mxu1 %v1131_v23 }
 0x14d   : > { %1038 = vmatprep.subr.bf16.mxu1 %v1271_v0 }
 0x150   : > { %1039 = vmatpush3.bf16.msra.mxu1 %v1132_v32 }
 0x151   : > { %1044 = vmatprep.subr.bf16.mxu1 %v1271_v0 }
 0x21e   : > { %v629_v25 = vpop.f32.mrb[0].mxu1 }
 0x21f   : > { %v630_v26 = vadd.f32 %v962_v24, %v629_v25  ;;  %v1034_v27 = vpop.f32.mrb[1].mxu1 }
 0x220   : > { %v632_v28 = vpop.f32.mrb[2].mxu1 }
 0x221   : > { %v636_v29 = vmul.f32 0.5, %v630_v26  ;;  %802 = vst [vmem:[%s435_s26] sm:$0xff] %v630_v26  ;;  %v1035_v30 = vpop.f32.mrb[3].mxu1  ;;  %s1203_s26 = scalar_lea.vmem %s1202_s22, 256 }
 0x223   : > { %v637_v31 = vmul.f32 1.442695, %v636_v29 }
 0x225   : > { %1137 = vpow2.f32 %v637_v31 }
 0x22f   : > { %v1138_v33 = vpop.eup %1137 }
 0x230   : > { %640 = vrot.lane.b32.xlu0 %v1138_v33, %s1273_s15  ;;  %s949_s15 = sshll.u32 %s415_s14, 3 }
 0x231   : > { %s417_s30 = scalar_lea.vmem [#allocation7], %s949_s15 }
 0x232   : > { %s821_s13 = sshll.u32 %s417_s30, 4  ;;  %s1567_s13 = int_to_ptr.vmem [resolvable:$true] %s821_s13 }
 0x233   : > { %s1197_s25 = scalar_lea.vmem %s1567_s13, 128  ;;  %p1204_p4 = scmp.lt.s32.totalorder %s1567_s13, %s1202_s22 }
 0x234   : > { %p1198_p10 = scmp.ne.s32.totalorder %s1567_s13, %s1197_s25  ;;  %p1205_p7 = scmp.lt.s32.totalorder %s1203_s26, %s1197_s25 }
 0x236   : > { %p1199_p2 = pnand %p1198_p10, %p1637_p1  ;;  %p1206_p8 = por %p1205_p7, %p1204_p4 }
 0x238   : > { %p1200_p3 = pneg %p1199_p2 }
 0x23a   : > { %p1207_p11 = pnand %p1206_p8, %p1200_p3 }
 0x2a2   : > { %v641_v35 = vpop.permute.xlu0 %640 }
 0x2a3   : > { %v643_v36 = vmul.f32 %v641_v35, %v635_v34 }
 0x2a5   : > { %v644_v37 = vadd.f32 %v643_v36, %v630_v26 }
 0x2a7   : > { %v645_v39 = vpack.c.bf16 %v644_v37, %v644_v37 }
 0x2a9   : > { %1041 = vmatmul.mubr.msk.bf16.vlgmr.msra.gmra.mrb[4].mxu1 %vm669_vm2, %v645_v39 }
 0x2aa   : > { %1045 = vmatpush3.bf16.msra.mxu1 %v1133_v38  ;;  %1052 = vmatprep.mubr.msk.bf16.mxu1 %vm1272_vm0, %v1271_v0 }
 0x2ab   : > { %1046 = vmatprep.subr.bf16.mxu1 %v1271_v0 }
 0x2ae   : > { %1047 = vmatpush3.bf16.msra.mxu1 %v1134_v40 }
 0x2af   : > { %1048 = vmatprep.subr.bf16.mxu1 %v1271_v0 }
 0x2b2   : > { %1049 = vmatpush3.bf16.msra.mxu1 %v1135_v41 }
 0x2b3   : > { %1050 = vmatprep.subr.bf16.mxu1 %v1271_v0 }
 0x2b6   : > { %1051 = vmatpush3.bf16.msra.mxu1 %v1136_v42 }
 0x37c   : > { %v707_v44 = vpop.f32.mrb[4].mxu1 }
 0x37d   : > { %v708_v45 = vadd.f32 %v968_v43, %v707_v44  ;;  %v1042_v46 = vpop.f32.mrb[5].mxu1 }
 0x37e   : > { %v710_v47 = vpop.f32.mrb[6].mxu1 }
 0x37f   : > { %v713_v48 = vmax.f32 %v708_v45, 0.0  ;;  %v1043_v49 = vpop.f32.mrb[7].mxu1 }
 0x381   : > { %v714_v50 = vpack.c.bf16 %v713_v48, %v713_v48 }
 0x383   : > { %1053 = vmatmul.mubr.msk.bf16.vlgmr.msra.gmra.mrb[8].mxu1 %vm591_vm1, %v714_v50 }
 0x456   : > { %v791_v52 = vpop.f32.mrb[8].mxu1 }
 0x457   : > { %v792_v53 = vadd.f32 %v972_v51, %v791_v52  ;;  %v1054_v54 = vpop.f32.mrb[9].mxu1 }
 0x458   : > { %v794_v55 = vpop.f32.mrb[10].mxu1 }
 0x459   : > { %v797_v56 = vmul.f32 0.5, %v792_v53  ;;  %v1055_v57 = vpop.f32.mrb[11].mxu1 }
 0x45b   : > { %1139 = vtanh.f32 %v797_v56 }
 0x465   : > { %v1140_v58 = vpop.eup %1139 }
 0x466   : > { %v799_v59 = vadd.f32 1.0, %v1140_v58 }
 0x468   : > { %v800_v60 = vmul.f32 0.5, %v799_v59 }
 0x46a   : > { %801 = vst [vmem:[%s417_s30] sm:$0xff] %v800_v60 }
 0x46b   : > { %1210 = shalt.err (!%p1207_p11)
}
 0x46c   : > { %s1211_s29 = scalar_lea.hbm %s1565_s12, 128  ;;  %s1215_s24 = scalar_lea.hbm %s1617_s10, 256 }
 0x46d   : > { %p1212_p13 = scmp.ne.s32.totalorder %s1565_s12, %s1211_s29  ;;  %p1216_p5 = scmp.lt.u32.totalorder %s1565_s12, %s1617_s10 }
 0x46e   : > { %p1217_p9 = scmp.lt.u32.totalorder %s1215_s24, %s1211_s29  ;;  %p1219_p10 = scmp.lt.u32.totalorder %s1211_s29, %s1565_s12 }
 0x46f   : > { %p1213_p0 = pnand %p1212_p13, %p1637_p1 }
 0x470   : > { %p1218_p12 = por %p1217_p9, %p1216_p5 }
 0x471   : > { %p1214_p6 = pneg %p1213_p0 }
 0x472   : > { %p1220_p2 = por %p1219_p10, %p1218_p12 }
 0x474   : > { %p1221_p3 = pnand %p1220_p2, %p1214_p6 }
 0x476   : > { %1224 = shalt.err (!%p1221_p3)
}
 0x477   : > { %1064 = dma.vmem_to_hbm [thread:$0]  (%p1637_p1), %s1567_s13, 128, %s1565_s12, %s804_s23  }
 0x478 PF: > { %p1081_p4 = scmp.ge.s32.totalorder %s1267_s20, 2  ;;  %s836_s16 = sand.u32 1, %s1255_s17  }
 0x479   : > { %p1638_p7 = scmp.ne.s32.totalorder %s1629_s28, 0  ;;  %s837_s25 = scalar_lea.sflag [#allocation4], %s836_s16 }
 0x47b   : > { %p1074_p8 = pnand %p1081_p4, %p1638_p7 }
 0x47d   : > { %1250 = dma.done.wait (!%p1074_p8), %s837_s25, 128  }
 0x47e   : > { %1252 = vsyncadd (!%p1074_p8), %s837_s25, 4294967168  ;;  %s1639_s20 = sld [smem:[#allocation12_spill]]  ;;  %s1640_s21 = sld [smem:[#allocation11_spill]] }
 0x47f   : > { %s1641_s19 = sld [smem:[#allocation13_spill]]  ;;  %s1642_s17 = smov %s1259_s18 }
 0x484   : > { %p24_p11 = scmp.ge.s32.totalorder %s1639_s20, 4   ;;  %s1643_s18 = smov %s1640_s21 }
 0x486   :  { %26 = sbr.rel (!%p24_p11) target bundleno = 5 (0x5), region = 119 }
 0x48d   :  { %849 = vsyncpa [#allocation3], 1 }
 0x48e   :  { %851 = vsyncpa [#allocation3 + $0x1], 1 }
 0x48f   :  { %852 = vsyncpa [#allocation6], 1 }
 0x490   :  { %853 = vsyncpa [#allocation4], 1 }
 0x491   :  { %855 = vsyncpa [#allocation4 + $0x1], 1 }

</bundles_post_ra>
